<compile_context>
chip_gen: v5e
topology: v5e:2x2
jax: 0.10.0
libtpu: 0.0.40
codegen_flags: <defaults>
</compile_context>

<pallas_src>
import functools

import jax
import jax.numpy as jnp
from jax.experimental import pallas as pl
from jax.experimental.pallas import tpu as pltpu


# ----------------------------------------------------------------------------
# One-time parameter preparation (outside the forward path)
# ----------------------------------------------------------------------------
def prepare_mha_params(params, num_heads):
    """Fold the attention scale into Q, fuse Q/K/V into a per-head-blocked weight,
    and pre-block the output projection by head.  Called once, not per forward."""
    C = params['wq'].shape[0]
    assert C % num_heads == 0
    Dh = C // num_heads
    scale = Dh ** (-0.5)

    def w_heads(w):                      # (C, C) -> (H, C, Dh): head-block the out cols
        return jnp.transpose(w.reshape(C, num_heads, Dh), (1, 0, 2))

    def b_heads(b):                      # (1, C) -> (H, 1, Dh)
        return b.reshape(num_heads, Dh)[:, None, :]

    wqkv = jnp.concatenate([w_heads(params['wq'] * scale),     # scale folded (exact)
                            w_heads(params['wk']),
                            w_heads(params['wv'])], axis=-1)    # (H, C, 3*Dh)
    bqkv = jnp.concatenate([b_heads(params['bq'] * scale),
                            b_heads(params['bk']),
                            b_heads(params['bv'])], axis=-1)    # (H, 1, 3*Dh)
    wp = params['wp'].reshape(num_heads, Dh, C)                 # (H, Dh, C)
    bp = params['bp']                                           # (1, C)
    return {'wqkv': wqkv, 'bqkv': bqkv, 'wp': wp, 'bp': bp}


# ----------------------------------------------------------------------------
# Fused multi-head attention kernel (one grid step == one batch element)
# ----------------------------------------------------------------------------
def _mha_kernel(*refs, H, Dh, self_attn, mm_dtype):
    if self_attn:
        x_ref, wqkv_ref, bqkv_ref, wp_ref, bp_ref, o_ref = refs
        c_ref = x_ref
    else:
        x_ref, c_ref, wqkv_ref, bqkv_ref, wp_ref, bp_ref, o_ref = refs

    f32 = jnp.float32
    cast = lambda a: a.astype(mm_dtype)          # matmul-input dtype; accumulate in f32

    x = x_ref[0]                                 # (Nq, C)
    wqkv = wqkv_ref[...]                         # (H, C, 3*Dh)
    bqkv = bqkv_ref[...]                         # (H, 1, 3*Dh)
    xh = jnp.broadcast_to(x, (H,) + x.shape)     # (H, Nq, C) — hoisted, done once

    if self_attn:
        # Single fused, head-blocked QKV projection (one batched matmul).
        qkv = jnp.einsum('hnc,hcd->hnd', cast(xh), cast(wqkv),
                         preferred_element_type=f32) + bqkv            # (H, Nq, 3Dh)
        q = qkv[..., :Dh]
        k = qkv[..., Dh:2 * Dh]
        v = qkv[..., 2 * Dh:]
    else:
        c = c_ref[0]                                                    # (Nk, C)
        ch = jnp.broadcast_to(c, (H,) + c.shape)
        q = jnp.einsum('hnc,hcd->hnd', cast(xh), cast(wqkv[..., :Dh]),
                       preferred_element_type=f32) + bqkv[..., :Dh]     # (H, Nq, Dh)
        kv = jnp.einsum('hnc,hcd->hnd', cast(ch), cast(wqkv[..., Dh:]),
                        preferred_element_type=f32) + bqkv[..., Dh:]    # (H, Nk, 2Dh)
        k = kv[..., :Dh]
        v = kv[..., Dh:]

    # Scores for ALL heads in one contraction over the trailing Dh axis of both
    # operands (trans_b form — no K transpose is ever materialized).
    s = jnp.einsum('hqd,hkd->hqk', cast(q), cast(k),
                   preferred_element_type=f32)                          # (H, Nq, Nk)

    # Numerically-stable softmax, batched across every (head, query) row at once.
    s = s - jnp.max(s, axis=-1, keepdims=True)
    p = jnp.exp(s)
    denom = jnp.sum(p, axis=-1, keepdims=True)                          # (H, Nq, 1)

    # Unnormalized context; fold the 1/row_sum scale in AFTER the matmul.
    ctx = jnp.einsum('hqk,hkd->hqd', cast(p), cast(v),
                     preferred_element_type=f32)                        # (H, Nq, Dh)
    ctx = ctx * pl.reciprocal(denom, approx=False)

    # Output projection with the head-concat folded in:
    #   out = sum_h ctx_h @ Wp[h*Dh:(h+1)*Dh, :]
    outh = jnp.einsum('hqd,hdc->hqc', cast(ctx), cast(wp_ref[...]),
                      preferred_element_type=f32)                       # (H, Nq, C)
    out = jnp.sum(outh, axis=0) + bp_ref[...]                           # (Nq, C)
    o_ref[0] = out.astype(o_ref.dtype)


def multi_head_attention(x, prepared, *, num_heads, context=None,
                         mm_dtype=jnp.float32):
    """Fused MHA forward (eval mode).  `prepared` comes from prepare_mha_params()."""
    B, Nq, C = x.shape
    assert C % num_heads == 0, "dim must be divisible by num_heads"
    H, Dh = num_heads, C // num_heads
    self_attn = context is None
    ctx = x if self_attn else context
    assert ctx.ndim == 3 and ctx.shape[0] == B and ctx.shape[2] == C, (
        "context must be (B, Nk, C) with the same batch and feature dims as x")
    Nk = ctx.shape[1]

    wqkv, bqkv, wp, bp = (prepared['wqkv'], prepared['bqkv'],
                          prepared['wp'], prepared['bp'])
    assert wqkv.shape == (H, C, 3 * Dh) and wp.shape == (H, Dh, C)

    kern = functools.partial(_mha_kernel, H=H, Dh=Dh,
                             self_attn=self_attn, mm_dtype=mm_dtype)

    def full_spec(a):   # whole array resident in VMEM, not re-fetched across steps
        zeros = (0,) * a.ndim
        return pl.BlockSpec(a.shape, lambda b: zeros)

    in_specs = [pl.BlockSpec((1, Nq, C), lambda b: (b, 0, 0))]
    operands = [x]
    if not self_attn:
        in_specs.append(pl.BlockSpec((1, Nk, C), lambda b: (b, 0, 0)))
        operands.append(ctx)
    in_specs += [full_spec(wqkv), full_spec(bqkv), full_spec(wp), full_spec(bp)]
    operands += [wqkv, bqkv, wp, bp]

    cost = pl.CostEstimate(
        flops=int(2 * B * (Nq * C * 3 * C + 2 * H * Nq * Nk * Dh + Nq * C * C)),
        transcendentals=int(B * H * Nq * Nk),
        bytes_accessed=int(4 * (x.size + (0 if self_attn else ctx.size)
                                + wqkv.size + bqkv.size + wp.size + bp.size
                                + B * Nq * C)),
    )

    out = pl.pallas_call(
        kern,
        grid=(B,),
        in_specs=in_specs,
        out_specs=pl.BlockSpec((1, Nq, C), lambda b: (b, 0, 0)),
        out_shape=jax.ShapeDtypeStruct((B, Nq, C), x.dtype),
        compiler_params=pltpu.CompilerParams(dimension_semantics=("parallel",)),
        cost_estimate=cost,
    )(*operands)
    return out


# ----------------------------------------------------------------------------
# Pure-JAX reference (mirrors the PyTorch forward, eval mode) for verification
# ----------------------------------------------------------------------------
def mha_reference(x, params, *, num_heads, context=None):
    hp = jax.lax.Precision.HIGHEST
    B, Nq, C = x.shape
    ctx = x if context is None else context
    Nk = ctx.shape[1]
    Dh = C // num_heads
    scale = Dh ** (-0.5)

    q = jnp.matmul(x, params['wq'], precision=hp) + params['bq']
    k = jnp.matmul(ctx, params['wk'], precision=hp) + params['bk']
    v = jnp.matmul(ctx, params['wv'], precision=hp) + params['bv']
    q = q.reshape(B, Nq, num_heads, Dh).transpose(0, 2, 1, 3)
    k = k.reshape(B, Nk, num_heads, Dh).transpose(0, 2, 1, 3)
    v = v.reshape(B, Nk, num_heads, Dh).transpose(0, 2, 1, 3)

    attn = jnp.matmul(q, jnp.swapaxes(k, -1, -2), precision=hp) * scale
    attn = jax.nn.softmax(attn, axis=-1)
    out = jnp.matmul(attn, v, precision=hp)                       # (B, H, Nq, Dh)
    out = out.transpose(0, 2, 1, 3).reshape(B, Nq, C)
    return jnp.matmul(out, params['wp'], precision=hp) + params['bp']


# ----------------------------------------------------------------------------
# Deterministic synthetic parameters + smoke test
# ----------------------------------------------------------------------------
def init_params(key, dim):
    keys = jax.random.split(key, 8)

    def linear(kw, kb, din, dout):
        w = jax.random.normal(kw, (din, dout), jnp.float32) / jnp.sqrt(din)
        b = jax.random.normal(kb, (1, dout), jnp.float32) * 0.02
        return w, b

    p = {}
    p['wq'], p['bq'] = linear(keys[0], keys[1], dim, dim)
    p['wk'], p['bk'] = linear(keys[2], keys[3], dim, dim)
    p['wv'], p['bv'] = linear(keys[4], keys[5], dim, dim)
    p['wp'], p['bp'] = linear(keys[6], keys[7], dim, dim)
    return p


if __name__ == "__main__":
    B, N, DIM, HEADS = 2, 8, 32, 4

    key = jax.random.PRNGKey(0)
    pkey, xkey, ckey = jax.random.split(key, 3)
    params = init_params(pkey, DIM)
    prepared = prepare_mha_params(params, HEADS)      # one-time weight prep
    x = jax.random.normal(xkey, (B, N, DIM), jnp.float32)

    # 1) Self-attention (context=None), f32 matmul inputs -> tight tolerance.
    out = jax.block_until_ready(multi_head_attention(x, prepared, num_heads=HEADS))
    ref = mha_reference(x, params, num_heads=HEADS)
    assert out.shape == (B, N, DIM), out.shape
    assert bool(jnp.all(jnp.isfinite(out)))
    err = float(jnp.max(jnp.abs(out - ref)))
    assert err < 1e-3, f"self-attention (f32) max abs err = {err}"

    # 2) Cross-attention (explicit context with a different sequence length).
    ctx = jax.random.normal(ckey, (B, 16, DIM), jnp.float32)
    out_x = jax.block_until_ready(
        multi_head_attention(x, prepared, num_heads=HEADS, context=ctx))
    ref_x = mha_reference(x, params, num_heads=HEADS, context=ctx)
    err_x = float(jnp.max(jnp.abs(out_x - ref_x)))
    assert err_x < 1e-3, f"cross-attention (f32) max abs err = {err_x}"

    # 3) bf16 matmul inputs (the at-scale MXU configuration), f32 accumulation.
    out_bf = jax.block_until_ready(
        multi_head_attention(x, prepared, num_heads=HEADS, mm_dtype=jnp.bfloat16))
    assert bool(jnp.all(jnp.isfinite(out_bf)))
    err_bf = float(jnp.max(jnp.abs(out_bf - ref)))
    assert err_bf < 5e-2, f"self-attention (bf16 inputs) max abs err = {err_bf}"

    print("KERNEL_OK")
</pallas_src>

<mosaic_0001>
module attributes {stable_mosaic.version = 11 : i64} {
  func.func @_mha_kernel(%arg0: i32, %arg1: memref<1x8x32xf32, #tpu.memory_space<vmem>>, %arg2: memref<4x32x24xf32, #tpu.memory_space<vmem>>, %arg3: memref<4x1x24xf32, #tpu.memory_space<vmem>>, %arg4: memref<4x8x32xf32, #tpu.memory_space<vmem>>, %arg5: memref<1x32xf32, #tpu.memory_space<vmem>>, %arg6: memref<1x8x32xf32, #tpu.memory_space<vmem>>) attributes {dimension_semantics = [#tpu.dimension_semantics<parallel>], iteration_bounds = array<i64: 2>, scalar_prefetch = 0 : i64, scratch_operands = 0 : i64, tpu.core_type = #tpu.core_type<tc>, window_params = [{transform_indices = @transform_0, window_bounds = array<i64: 1, 8, 32>}, {pipeline_mode = #tpu.pipeline_mode<synchronous>, transform_indices = @transform_1, window_bounds = array<i64: 4, 32, 24>}, {pipeline_mode = #tpu.pipeline_mode<synchronous>, transform_indices = @transform_2, window_bounds = array<i64: 4, 1, 24>}, {pipeline_mode = #tpu.pipeline_mode<synchronous>, transform_indices = @transform_3, window_bounds = array<i64: 4, 8, 32>}, {pipeline_mode = #tpu.pipeline_mode<synchronous>, transform_indices = @transform_4, window_bounds = array<i64: 1, 32>}, {transform_indices = @transform_5, window_bounds = array<i64: 1, 8, 32>}]} {
    %c0 = arith.constant 0 : index
    %c0_0 = arith.constant 0 : index
    %c0_1 = arith.constant 0 : index
    %0 = vector.load %arg1[%c0, %c0_0, %c0_1] : memref<1x8x32xf32, #tpu.memory_space<vmem>>, vector<1x8x32xf32>
    %1 = vector.shape_cast %0 : vector<1x8x32xf32> to vector<8x32xf32>
    %c0_2 = arith.constant 0 : index
    %c0_3 = arith.constant 0 : index
    %c0_4 = arith.constant 0 : index
    %2 = vector.load %arg2[%c0_2, %c0_3, %c0_4] : memref<4x32x24xf32, #tpu.memory_space<vmem>>, vector<4x32x24xf32>
    %c0_5 = arith.constant 0 : index
    %c0_6 = arith.constant 0 : index
    %c0_7 = arith.constant 0 : index
    %3 = vector.load %arg3[%c0_5, %c0_6, %c0_7] : memref<4x1x24xf32, #tpu.memory_space<vmem>>, vector<4x1x24xf32>
    %4 = vector.shape_cast %1 : vector<8x32xf32> to vector<1x8x32xf32>
    %5 = vector.broadcast %4 : vector<1x8x32xf32> to vector<4x8x32xf32>
    "tpu.trace_start"() <{level = 10 : i32, message = "hnc,hcd->hnd"}> : () -> ()
    %cst = arith.constant dense<0.000000e+00> : vector<4x8x24xf32>
    %6 = tpu.matmul %5, %2, %cst {dimension_numbers = #tpu.dot_dimension_numbers<[2], [1], [1], [2], [0, 0, 0, 1, 1, 2], [0], [0]>} : vector<4x8x32xf32>, vector<4x32x24xf32>, vector<4x8x24xf32> -> vector<4x8x24xf32>
    "tpu.trace_stop"() : () -> ()
    %7 = vector.broadcast %3 : vector<4x1x24xf32> to vector<4x8x24xf32>
    %8 = arith.addf %6, %7 : vector<4x8x24xf32>
    %9 = vector.extract_strided_slice %8 {offsets = [0, 0, 0], sizes = [4, 8, 8], strides = [1, 1, 1]} : vector<4x8x24xf32> to vector<4x8x8xf32>
    %10 = vector.extract_strided_slice %8 {offsets = [0, 0, 8], sizes = [4, 8, 8], strides = [1, 1, 1]} : vector<4x8x24xf32> to vector<4x8x8xf32>
    %11 = vector.extract_strided_slice %8 {offsets = [0, 0, 16], sizes = [4, 8, 8], strides = [1, 1, 1]} : vector<4x8x24xf32> to vector<4x8x8xf32>
    "tpu.trace_start"() <{level = 10 : i32, message = "hqd,hkd->hqk"}> : () -> ()
    %cst_8 = arith.constant dense<0.000000e+00> : vector<4x8x8xf32>
    %12 = tpu.matmul %9, %10, %cst_8 {dimension_numbers = #tpu.dot_dimension_numbers<[2], [2], [1], [1], [0, 0, 0, 1, 1, 1], [0], [0]>} : vector<4x8x8xf32>, vector<4x8x8xf32>, vector<4x8x8xf32> -> vector<4x8x8xf32>
    "tpu.trace_stop"() : () -> ()
    %cst_9 = arith.constant dense<0xFF800000> : vector<4x8xf32>
    %13 = vector.multi_reduction <maximumf>, %12, %cst_9 [2] : vector<4x8x8xf32> to vector<4x8xf32>
    %14 = vector.shape_cast %13 : vector<4x8xf32> to vector<4x8x1xf32>
    %15 = vector.broadcast %14 : vector<4x8x1xf32> to vector<4x8x8xf32>
    %16 = arith.subf %12, %15 : vector<4x8x8xf32>
    %17 = math.exp %16 : vector<4x8x8xf32>
    %cst_10 = arith.constant dense<0.000000e+00> : vector<4x8xf32>
    %18 = vector.multi_reduction <add>, %17, %cst_10 [2] : vector<4x8x8xf32> to vector<4x8xf32>
    %19 = vector.shape_cast %18 : vector<4x8xf32> to vector<4x8x1xf32>
    "tpu.trace_start"() <{level = 10 : i32, message = "hqk,hkd->hqd"}> : () -> ()
    %cst_11 = arith.constant dense<0.000000e+00> : vector<4x8x8xf32>
    %20 = tpu.matmul %17, %11, %cst_11 {dimension_numbers = #tpu.dot_dimension_numbers<[2], [1], [1], [2], [0, 0, 0, 1, 1, 2], [0], [0]>} : vector<4x8x8xf32>, vector<4x8x8xf32>, vector<4x8x8xf32> -> vector<4x8x8xf32>
    "tpu.trace_stop"() : () -> ()
    %21 = tpu.reciprocal %19 : vector<4x8x1xf32> -> vector<4x8x1xf32>
    %22 = vector.broadcast %21 : vector<4x8x1xf32> to vector<4x8x8xf32>
    %23 = arith.mulf %20, %22 : vector<4x8x8xf32>
    %c0_12 = arith.constant 0 : index
    %c0_13 = arith.constant 0 : index
    %c0_14 = arith.constant 0 : index
    %24 = vector.load %arg4[%c0_12, %c0_13, %c0_14] : memref<4x8x32xf32, #tpu.memory_space<vmem>>, vector<4x8x32xf32>
    "tpu.trace_start"() <{level = 10 : i32, message = "hqd,hdc->hqc"}> : () -> ()
    %cst_15 = arith.constant dense<0.000000e+00> : vector<4x8x32xf32>
    %25 = tpu.matmul %23, %24, %cst_15 {dimension_numbers = #tpu.dot_dimension_numbers<[2], [1], [1], [2], [0, 0, 0, 1, 1, 2], [0], [0]>} : vector<4x8x8xf32>, vector<4x8x32xf32>, vector<4x8x32xf32> -> vector<4x8x32xf32>
    "tpu.trace_stop"() : () -> ()
    %cst_16 = arith.constant dense<0.000000e+00> : vector<8x32xf32>
    %26 = vector.multi_reduction <add>, %25, %cst_16 [0] : vector<4x8x32xf32> to vector<8x32xf32>
    %c0_17 = arith.constant 0 : index
    %c0_18 = arith.constant 0 : index
    %27 = vector.load %arg5[%c0_17, %c0_18] : memref<1x32xf32, #tpu.memory_space<vmem>>, vector<1x32xf32>
    %28 = vector.broadcast %27 : vector<1x32xf32> to vector<8x32xf32>
    %29 = arith.addf %26, %28 : vector<8x32xf32>
    %c0_19 = arith.constant 0 : index
    %c0_20 = arith.constant 0 : index
    %c0_21 = arith.constant 0 : index
    %30 = vector.load %arg6[%c0_19, %c0_20, %c0_21] : memref<1x8x32xf32, #tpu.memory_space<vmem>>, vector<1x8x32xf32>
    %31 = vector.shape_cast %30 : vector<1x8x32xf32> to vector<8x32xf32>
    %32 = vector.shape_cast %29 : vector<8x32xf32> to vector<1x8x32xf32>
    tpu.vector_store %arg6[%c0_19, %c0_20, %c0_21], %32 {strides = array<i32>} : memref<1x8x32xf32, #tpu.memory_space<vmem>>, vector<1x8x32xf32>,
    return
  }
  func.func @transform_0(%arg0: i32) -> (i32, i32, i32) {
    %c0_i32 = arith.constant 0 : i32
    %c0_i32_0 = arith.constant 0 : i32
    %c0_i32_1 = arith.constant 0 : i32
    return %arg0, %c0_i32, %c0_i32_0 : i32, i32, i32
  }
  func.func @transform_1(%arg0: i32) -> (i32, i32, i32) {
    %c0_i32 = arith.constant 0 : i32
    %c0_i32_0 = arith.constant 0 : i32
    %c0_i32_1 = arith.constant 0 : i32
    %c0_i32_2 = arith.constant 0 : i32
    return %c0_i32, %c0_i32_0, %c0_i32_1 : i32, i32, i32
  }
  func.func @transform_2(%arg0: i32) -> (i32, i32, i32) {
    %c0_i32 = arith.constant 0 : i32
    %c0_i32_0 = arith.constant 0 : i32
    %c0_i32_1 = arith.constant 0 : i32
    %c0_i32_2 = arith.constant 0 : i32
    return %c0_i32, %c0_i32_0, %c0_i32_1 : i32, i32, i32
  }
  func.func @transform_3(%arg0: i32) -> (i32, i32, i32) {
    %c0_i32 = arith.constant 0 : i32
    %c0_i32_0 = arith.constant 0 : i32
    %c0_i32_1 = arith.constant 0 : i32
    %c0_i32_2 = arith.constant 0 : i32
    return %c0_i32, %c0_i32_0, %c0_i32_1 : i32, i32, i32
  }
  func.func @transform_4(%arg0: i32) -> (i32, i32) {
    %c0_i32 = arith.constant 0 : i32
    %c0_i32_0 = arith.constant 0 : i32
    %c0_i32_1 = arith.constant 0 : i32
    return %c0_i32, %c0_i32_0 : i32, i32
  }
  func.func @transform_5(%arg0: i32) -> (i32, i32, i32) {
    %c0_i32 = arith.constant 0 : i32
    %c0_i32_0 = arith.constant 0 : i32
    %c0_i32_1 = arith.constant 0 : i32
    return %arg0, %c0_i32, %c0_i32_0 : i32, i32, i32
  }
}

</mosaic_0001>

<bundles_post_ra>
// kernel: tpu_custom_call.1
= control target key start
LH: loop header
LB: loop body
LE: loop exit
PB: predicated region body
PF: predicated region fallthrough
CT: control target
= control target key end

     0   :  { %10 = vsyncpa [#allocation3], 0  ;;  %s1229_s0 = inlined_call_operand.vmem [shape: f32[2,8,32], index: 0, kind: input, shape index: {}]   ;;  %s1230_s1 = inlined_call_operand.vmem [shape: f32[4,32,24], index: 1, kind: input, shape index: {}]   ;;  %s1231_s2 = inlined_call_operand.vmem [shape: f32[4,1,24], index: 2, kind: input, shape index: {}]   ;;  %s1232_s3 = inlined_call_operand.vmem [shape: f32[4,8,32], index: 3, kind: input, shape index: {}]   ;;  %s1233_s4 = inlined_call_operand.vmem [shape: f32[1,32], index: 4, kind: input, shape index: {}]   ;;  %s1234_s5 = inlined_call_operand.hbm [shape: f32[2,8,32], index: 5, kind: output, shape index: {}]  }
   0x1   :  { %12 = vsyncpa [#allocation3 + $0x1], 0  ;;  %s1028_s18 = smov 0   ;;  %s1030_s19 = smov 0  }
   0x2   :  { %s1032_s20 = smov 0   ;;  %s1034_s21 = smov 0  }
   0x3 LB: > { %s1049_s22 = sadd.s32 4294967295, %s994_s21   ;;  %s830_s23 = sadd.s32 4294967294, %s994_s21   ;;  %s994_s21 = sphi %s1034_s21, %s1242_s21   ;;  %s990_s20 = sphi %s1032_s20, %s1241_s20   ;;  %s986_s19 = sphi %s1030_s19, %s1240_s19   ;;  %s982_s18 = sphi %s1028_s18, %s1239_s18  }
   0x4   : > { %s1053_s24 = sadd.s32 1, %s994_s21   ;;  %s135_s25 = sadd.s32 1, %s990_s20 }
   0x5   : > { %s132_s26 = ssub.s32 %s994_s21, %s1053_s24  ;;  %p145_p0 = scmp.ne.s32.totalorder %s990_s20, %s986_s19 }
   0x6   : > { %p133_p1 = scmp.eq.s32.totalorder %s132_s26, 0  ;;  %p146_p2 = scmp.eq.s32.totalorder %s1049_s22, 1 }
   0x7   : > { %p151_p3 = scmp.ne.s32.totalorder %s986_s19, %s982_s18  ;;  %p152_p4 = scmp.eq.s32.totalorder %s830_s23, 1 }
   0x8   : > { %s1064_s27 = scalar_select %p133_p1, %s990_s20, %s135_s25  }
   0x9   : > { %p1066_p5 = por %p146_p2, %p145_p0  ;;  %p1070_p6 = por %p152_p4, %p151_p3 }
   0xa   : > { %p833_p7 = scmp.ge.s32.totalorder %s994_s21, 1  ;;  %p189_p8 = scmp.lt.s32.totalorder %s994_s21, 3 }
   0xc   : > { %p190_p9 = pnand %p833_p7, %p189_p8 }
   0xd   : > { %p216_p10 = scmp.lt.s32.totalorder (!%p190_p9), %s1049_s22, 1  ;;  %s857_s14 = sshll.u32 (!%p190_p9), %s1049_s22, 3 }
   0xe   : > { %193 = sbr.rel (%p190_p9) target bundleno = 830 (0x33e), region = 40  ;;  %s766_s17 = scalar_lea.hbm (!%p190_p9), %s1234_s5, %s857_s14 }
   0xf   : > { %s952_s11 = scalar_lea.hbm (!%p190_p9), %s1234_s5, 16 }
  0x13   : > { %v224_v0 = vld [vmem:[%s1230_s1 + $0x18] sm:$0xff]  ;;  %v223_v3 = vld [vmem:[%s1230_s1 + $0x10] sm:$0xff]  ;;  %v222_v6 = vld [vmem:[%s1230_s1 + $0x8] sm:$0xff]  ;;  %s217_s30 = scalar_select %p216_p10, %s1049_s22, 1  ;;  %vm253_vm0 = vcmask 261120   ;;  %vm340_vm1 = vcmask 64512  }
  0x14   : > { %v232_v1 = vld [vmem:[%s1230_s1 + $0x58] sm:$0xff]  ;;  %269 = vmatpush.msra.mxu0 %v224_v0  ;;  %v231_v4 = vld [vmem:[%s1230_s1 + $0x50] sm:$0xff]  ;;  %v230_v7 = vld [vmem:[%s1230_s1 + $0x48] sm:$0xff] }
  0x15   : > { %v236_v2 = vld [vmem:[%s1230_s1 + $0x78] sm:$0xff]  ;;  %309 = vmatpush.msra.mxu2 %v232_v1  ;;  %v235_v5 = vld [vmem:[%s1230_s1 + $0x70] sm:$0xff]  ;;  %v234_v8 = vld [vmem:[%s1230_s1 + $0x68] sm:$0xff]  ;;  %s835_s12 = sshll.u32 %s217_s30, 3  ;;  %s770_s30 = sshll.u32 %s766_s17, 4  ;;  %s771_s30 = int_to_ptr.hbm [resolvable:$true] %s770_s30 }
  0x16   : > { %329 = vmatpush.msra.mxu3 %v236_v2  ;;  %270 = vmatpush.msra.mxu0 %v223_v3  ;;  %v221_v9 = vld [vmem:[%s1230_s1] sm:$0xff]  ;;  %v228_v11 = vld [vmem:[%s1230_s1 + $0x38] sm:$0xff]  ;;  %s219_s25 = scalar_lea.vmem %s1229_s0, %s835_s12  ;;  %v227_v14 = vld [vmem:[%s1230_s1 + $0x30] sm:$0xff]  ;;  %s996_s12 = smov 120  }
  0x17   : > { %310 = vmatpush.msra.mxu2 %v231_v4  ;;  %v229_v10 = vld [vmem:[%s1230_s1 + $0x40] sm:$0xff]  ;;  %289 = vmatpush.msra.mxu1 %v228_v11  ;;  %v226_v15 = vld [vmem:[%s1230_s1 + $0x28] sm:$0xff]  ;;  %s946_s7 = sshra.s32 %s771_s30, 4  ;;  %s947_s7 = int_to_ptr.hbm [resolvable:$true] %s946_s7 }
  0x18   : > { %330 = vmatpush.msra.mxu3 %v235_v5  ;;  %271 = vmatpush.msra.mxu0 %v222_v6  ;;  %v233_v12 = vld [vmem:[%s1230_s1 + $0x60] sm:$0xff]  ;;  %s948_s8 = scalar_lea.hbm %s947_s7, 8  ;;  %p953_p0 = scmp.lt.s32.totalorder %s947_s7, %s1234_s5 }
  0x19   : > { %311 = vmatpush.msra.mxu2 %v230_v7  ;;  %v220_v13 = vld [vmem:[%s219_s25] sm:$0xff]  ;;  %290 = vmatpush.msra.mxu1 %v227_v14  ;;  %s997_s25 = smov 112   ;;  %v648_v7 = vld [vmem:[%s1232_s3 + $0x10] sm:$0xff]  ;;  %p949_p11 = scmp.ne.s32.totalorder %s947_s7, %s948_s8 }
  0x1a   : > { %331 = vmatpush.msra.mxu3 %v234_v8  ;;  %272 = vmatpush.msra.mxu0 %v221_v9  ;;  %v225_v16 = vld [vmem:[%s1230_s1 + $0x20] sm:$0xff]  ;;  %v649_v9 = vld [vmem:[%s1232_s3 + $0x18] sm:$0xff]  ;;  %p954_p1 = scmp.lt.s32.totalorder %s952_s11, %s948_s8 }
  0x1b   : > { %312 = vmatpush.msra.mxu2 %v229_v10  ;;  %836 = vmatmul.msk.f32.vlgmr.msra.gmra.mxu0 %vm253_vm0, %v220_v13  ;;  %v911_v17 = vld [vmem:[%s1231_s2] ss:$0 sm:$0xff]  ;;  %v912_v20 = vld [vmem:[%s1231_s2 + $0x2] ss:$0 sm:$0xff]  ;;  %v913_v21 = vld [vmem:[%s1231_s2 + $0x3] ss:$0 sm:$0xff]  ;;  %p950_p12 = pnand %p949_p11, %p1066_p5 }
  0x1c   : > { %332 = vmatpush.msra.mxu3 %v233_v12  ;;  %838 = vmatmul.msk.f32.vlgmr.msra.gmra.mxu2 %vm253_vm0, %v220_v13  ;;  %v914_v22 = vld [vmem:[%s1231_s2 + $0x1] ss:$0 sm:$0xff]  ;;  %p955_p2 = por %p954_p1, %p953_p0 }
  0x1d   : > { %839 = vmatmul.msk.f32.vlgmr.msra.gmra.mxu3 %vm253_vm0, %v220_v13  ;;  %291 = vmatpush.msra.mxu1 %v226_v15  ;;  %v646_v6 = vld [vmem:[%s1232_s3] sm:$0xff]  ;;  %p951_p13 = pneg %p950_p12 }
  0x1f   : > { %292 = vmatpush.msra.mxu1 %v225_v16  ;;  %p956_p3 = pnand %p955_p2, %p951_p13 }
  0x20   : > { %837 = vmatmul.msk.f32.vlgmr.msra.gmra.mxu1 %vm253_vm0, %v220_v13  ;;  %v647_v13 = vld [vmem:[%s1232_s3 + $0x8] sm:$0xff] }
  0x98   : > { %v274_v18 = vpop.f32.mrf.mxu0 }
  0x99   : > { %v275_v19 = vadd.f32 %v911_v17, %v274_v18 }
  0x9b   : > { %338 = vrot.lane.b32.xlu1 %v275_v19, %s996_s12 }
  0x9d   : > { %v294_v27 = vpop.f32.mrf.mxu1 }
  0x9e   : > { %v295_v28 = vadd.f32 %v914_v22, %v294_v27 }
  0x9f   : > { %v314_v23 = vpop.f32.mrf.mxu2 }
  0xa0   : > { %v334_v24 = vpop.f32.mrf.mxu3  ;;  %v315_v25 = vadd.f32 %v912_v20, %v314_v23  ;;  %v906_v45 = vpack.i.bf16 %v295_v28, %v275_v19 }
  0xa1   : > { %v335_v26 = vadd.f32 %v913_v21, %v334_v24 }
  0xa2   : > { %393 = vrot.lane.b32.xlu0 %v315_v25, %s996_s12 }
  0xa3   : > { %v901_v29 = vpack.i.bf16 %v335_v26, %v315_v25  ;;  %366 = vrot.lane.b32.xlu1 %v295_v28, %s996_s12 }
  0xa5   : > { %902 = vrot.lane.b32.xlu2 %v901_v29, %s997_s25 }
  0xaa   : > { %420 = vrot.lane.b32.xlu0 %v335_v26, %s996_s12  ;;  %s213_s12 = sand.u32 1, %s986_s19  }
  0xab   : > { %s834_s13 = sshll.u32 %s213_s12, 3  ;;  %s756_s6 = scalar_lea.sflag [#allocation3], %s213_s12 }
  0xac   : > { %s215_s22 = scalar_lea.vmem [#allocation2], %s834_s13 }
  0xad   : > { %s768_s26 = sshll.u32 %s215_s22, 4  ;;  %s769_s26 = int_to_ptr.vmem [resolvable:$true] %s768_s26 }
  0xff   : > { %v903_v31 = vpop.permute.xlu2 %902 }
 0x100   : > { %v904_v32 = vunpack.i.l.bf16 %v903_v31  ;;  %v905_v35 = vunpack.i.h.bf16 %v903_v31 }
 0x10d   : > { %v339_v30 = vpop.permute.xlu1 %338 }
 0x10e   : > { %840 = vmatpush.xpose.msk.msrb.mxu0 %vm340_vm1, %v339_v30 }
 0x111   : > { %841 = vmatmul.msk.f32.vlgmr.msrb.gmra.mxu0 %vm340_vm1, %v275_v19 }
 0x114   : > { %v394_v33 = vpop.permute.xlu0 %393 }
 0x115   : > { %844 = vmatpush.xpose.msk.msrb.mxu2 %vm340_vm1, %v394_v33  ;;  %v367_v34 = vpop.permute.xlu1 %366 }
 0x116   : > { %842 = vmatpush.xpose.msk.msrb.mxu1 %vm340_vm1, %v367_v34 }
 0x118   : > { %845 = vmatmul.msk.f32.vlgmr.msrb.gmra.mxu2 %vm340_vm1, %v315_v25 }
 0x119   : > { %555 = vmatpush.msra.mxu2 %v904_v32  ;;  %843 = vmatmul.msk.f32.vlgmr.msrb.gmra.mxu1 %vm340_vm1, %v295_v28 }
 0x11b   : > { %714 = vmatpush.msrb.mxu2 %v648_v7  ;;  %v915_v7 = vld [vmem:[%s1233_s4] ss:$0 sm:$0xff] }
 0x11c   : > { %v421_v36 = vpop.permute.xlu0 %420 }
 0x11d   : > { %846 = vmatpush.xpose.msk.msrb.mxu3 %vm340_vm1, %v421_v36 }
 0x120   : > { %847 = vmatmul.msk.f32.vlgmr.msrb.gmra.mxu3 %vm340_vm1, %v335_v26 }
 0x121   : > { %581 = vmatpush.msra.mxu3 %v905_v35 }
 0x123   : > { %737 = vmatpush.msrb.mxu3 %v649_v9 }
 0x18e   : > { %v362_v37 = vpop.f32.mrf.mxu0 }
 0x18f   : > { %v446_v38 = vsel %vm340_vm1, %v362_v37, -inf }
 0x190   : > { %447 = vmax.xlane.f32.xlu0 %v446_v38 }
 0x196   : > { %v389_v39 = vpop.f32.mrf.mxu1 }
 0x197   : > { %v449_v40 = vsel %vm340_vm1, %v389_v39, -inf }
 0x198   : > { %450 = vmax.xlane.f32.xlu1 %v449_v40 }
 0x19b   : > { %v416_v41 = vpop.f32.mrf.mxu2 }
 0x19c   : > { %v452_v42 = vsel %vm340_vm1, %v416_v41, -inf }
 0x19d   : > { %453 = vmax.xlane.f32.xlu2 %v452_v42 }
 0x1a3   : > { %v443_v43 = vpop.f32.mrf.mxu3 }
 0x1a4   : > { %v455_v44 = vsel %vm340_vm1, %v443_v43, -inf }
 0x1a5   : > { %456 = vmax.xlane.f32.xlu2 %v455_v44 }
 0x1bd   : > { %907 = vrot.lane.b32.xlu2 %v906_v45, %s997_s25 }
 0x203   : > { %v448_v46 = vpop.xlane.xlu0 %447 }
 0x204   : > { %v458_v47 = vsub.f32 %v362_v37, %v448_v46 }
 0x206   : > { %v462_v48 = vmul.f32 1.442695, %v458_v47 }
 0x208   : > { %916 = vpow2.f32 %v462_v48 }
 0x20b   : > { %v451_v52 = vpop.xlane.xlu1 %450 }
 0x20c   : > { %v459_v55 = vsub.f32 %v389_v39, %v451_v52 }
 0x20e   : > { %v917_v49 = vpop.eup %916  ;;  %v464_v56 = vmul.f32 1.442695, %v459_v55 }
 0x20f   : > { %v470_v50 = vsel %vm340_vm1, %v917_v49, 0.0 }
 0x210   : > { %v454_v51 = vpop.xlane.xlu2 %453  ;;  %471 = vadd.xlane.f32.xlu1 %v470_v50 }
 0x211   : > { %v460_v53 = vsub.f32 %v416_v41, %v454_v51 }
 0x213   : > { %v466_v54 = vmul.f32 1.442695, %v460_v53 }
 0x215   : > { %918 = vpow2.f32 %v466_v54 }
 0x216   : > { %920 = vpow2.f32 %v464_v56 }
 0x218   : > { %v457_v57 = vpop.xlane.xlu2 %456 }
 0x219   : > { %v461_v58 = vsub.f32 %v443_v43, %v457_v57 }
 0x21b   : > { %v919_v59 = vpop.eup %918  ;;  %v468_v60 = vmul.f32 1.442695, %v461_v58 }
 0x21c   : > { %850 = vmatmul.msk.f32.vlgmr.msra.gmra.mxu2 %vm340_vm1, %v919_v59  ;;  %v476_v61 = vsel %vm340_vm1, %v919_v59, 0.0  ;;  %v921_v1 = vpop.eup %920 }
 0x21d   : > { %922 = vpow2.f32 %v468_v60  ;;  %477 = vadd.xlane.f32.xlu2 %v476_v61  ;;  %v473_v4 = vsel %vm340_vm1, %v921_v1, 0.0 }
 0x220   : > { %v908_v62 = vpop.permute.xlu2 %907 }
 0x221   : > { %v910_v63 = vunpack.i.h.bf16 %v908_v62  ;;  %v909_v0 = vunpack.i.l.bf16 %v908_v62 }
 0x223   : > { %v923_v2 = vpop.eup %922  ;;  %503 = vmatpush.msra.mxu0 %v909_v0  ;;  %529 = vmatpush.msra.mxu1 %v910_v63 }
 0x224   : > { %848 = vmatmul.msk.f32.vlgmr.msra.gmra.mxu0 %vm340_vm1, %v917_v49  ;;  %849 = vmatmul.msk.f32.vlgmr.msra.gmra.mxu1 %vm340_vm1, %v921_v1  ;;  %v479_v3 = vsel %vm340_vm1, %v923_v2, 0.0 }
 0x225   : > { %851 = vmatmul.msk.f32.vlgmr.msra.gmra.mxu3 %vm340_vm1, %v923_v2  ;;  %480 = vadd.xlane.f32.xlu0 %v479_v3 }
 0x226   : > { %668 = vmatpush.msrb.mxu0 %v646_v6  ;;  %691 = vmatpush.msrb.mxu1 %v647_v13 }
 0x22d   : > { %474 = vadd.xlane.f32.xlu0 %v473_v4 }
 0x283   : > { %v472_v5 = vpop.xlane.xlu1 %471 }
 0x284   : > { %924 = vrcp.f32 %v472_v5  ;;  %vm591_vm3 = vweird.f32 %v472_v5  ;;  %v597_v20 = vand.u32 2147483648, %v472_v5  ;;  %v595_v24 = vand.u32 2147483647, %v472_v5 }
 0x286   : > { %v598_v30 = vor.u32 1.1754944e-38, %v597_v20  ;;  %vm596_vm9 = vcmp.eq.f32.partialorder %v595_v24, 8.507059e+37 }
 0x28a   : > { %v925_v8 = vpop.eup %924 }
 0x28b   : > { %v587_v10 = vmul.f32 %v925_v8, %v472_v5  ;;  %vm592_vm2 = vweird.f32 %v925_v8 }
 0x28c   : > { %vm1179_vm5 = vmor %vm591_vm3, %vm592_vm2 }
 0x28d   : > { %v588_v12 = vsub.f32 1.0, %v587_v10 }
 0x28f   : > { %v589_v14 = vmul.f32 %v925_v8, %v588_v12 }
 0x290   : > { %v478_v11 = vpop.xlane.xlu2 %477 }
 0x291   : > { %926 = vrcp.f32 %v478_v11  ;;  %v590_v19 = vadd.f32 %v925_v8, %v589_v14  ;;  %v625_v21 = vand.u32 2147483648, %v478_v11  ;;  %v623_v23 = vand.u32 2147483647, %v478_v11 }
 0x292   : > { %vm619_vm6 = vweird.f32 %v478_v11 }
 0x293   : > { %v594_v27 = vsel %vm1179_vm5, %v925_v8, %v590_v19  ;;  %v626_v29 = vor.u32 1.1754944e-38, %v625_v21  ;;  %vm624_vm8 = vcmp.eq.f32.partialorder %v623_v23, 8.507059e+37 }
 0x294   : > { %v599_v37 = vsel %vm596_vm9, %v598_v30, %v594_v27 }
 0x297   : > { %v927_v15 = vpop.eup %926 }
 0x298   : > { %v615_v16 = vmul.f32 %v927_v15, %v478_v11  ;;  %v481_v17 = vpop.xlane.xlu0 %480  ;;  %vm620_vm4 = vweird.f32 %v927_v15 }
 0x299   : > { %928 = vrcp.f32 %v481_v17  ;;  %vm621_vm7 = vmor %vm619_vm6, %vm620_vm4  ;;  %v639_v41 = vand.u32 2147483648, %v481_v17  ;;  %v637_v43 = vand.u32 2147483647, %v481_v17  ;;  %vm633_vm11 = vweird.f32 %v481_v17 }
 0x29a   : > { %v616_v18 = vsub.f32 1.0, %v615_v16 }
 0x29b   : > { %v640_v46 = vor.u32 1.1754944e-38, %v639_v41  ;;  %vm638_vm13 = vcmp.eq.f32.partialorder %v637_v43, 8.507059e+37 }
 0x29c   : > { %v617_v22 = vmul.f32 %v927_v15, %v616_v18 }
 0x29e   : > { %v618_v26 = vadd.f32 %v927_v15, %v617_v22 }
 0x29f   : > { %v929_v28 = vpop.eup %928  ;;  %v557_v34 = vpop.f32.mrf.mxu2 }
 0x2a0   : > { %v629_v31 = vmul.f32 %v929_v28, %v481_v17  ;;  %v622_v32 = vsel %vm621_vm7, %v927_v15, %v618_v26  ;;  %v475_v33 = vpop.xlane.xlu0 %474  ;;  %vm634_vm10 = vweird.f32 %v929_v28 }
 0x2a1   : > { %v627_v35 = vsel %vm624_vm8, %v626_v29, %v622_v32  ;;  %930 = vrcp.f32 %v475_v33  ;;  %v505_v36 = vpop.f32.mrf.mxu0  ;;  %vm635_vm12 = vmor %vm633_vm11, %vm634_vm10  ;;  %v611_v53 = vand.u32 2147483648, %v475_v33  ;;  %v609_v55 = vand.u32 2147483647, %v475_v33  ;;  %v531_v59 = vpop.f32.mrf.mxu1 }
 0x2a2   : > { %v630_v38 = vsub.f32 1.0, %v629_v31  ;;  %v644_v39 = vmul.f32 %v627_v35, %v557_v34  ;;  %v642_v40 = vmul.f32 %v599_v37, %v505_v36  ;;  %vm605_vm15 = vweird.f32 %v475_v33 }
 0x2a3   : > { %v612_v57 = vor.u32 1.1754944e-38, %v611_v53  ;;  %vm610_vm3 = vcmp.eq.f32.partialorder %v609_v55, 8.507059e+37 }
 0x2a4   : > { %852 = vmatmul.msk.f32.vlgmr.msrb.gmra.mxu0 %vm340_vm1, %v642_v40  ;;  %854 = vmatmul.msk.f32.vlgmr.msrb.gmra.mxu2 %vm340_vm1, %v644_v39  ;;  %v631_v42 = vmul.f32 %v929_v28, %v630_v38 }
 0x2a6   : > { %v632_v44 = vadd.f32 %v929_v28, %v631_v42 }
 0x2a7   : > { %v931_v45 = vpop.eup %930 }
 0x2a8   : > { %v601_v47 = vmul.f32 %v931_v45, %v475_v33  ;;  %v636_v48 = vsel %vm635_vm12, %v929_v28, %v632_v44  ;;  %v583_v49 = vpop.f32.mrf.mxu3  ;;  %vm606_vm14 = vweird.f32 %v931_v45 }
 0x2a9   : > { %v641_v50 = vsel %vm638_vm13, %v640_v46, %v636_v48  ;;  %vm607_vm2 = vmor %vm605_vm15, %vm606_vm14 }
 0x2aa   : > { %v602_v51 = vsub.f32 1.0, %v601_v47  ;;  %v645_v52 = vmul.f32 %v641_v50, %v583_v49 }
 0x2ac   : > { %v603_v54 = vmul.f32 %v931_v45, %v602_v51  ;;  %855 = vmatmul.msk.f32.vlgmr.msrb.gmra.mxu3 %vm340_vm1, %v645_v52 }
 0x2ae   : > { %v604_v56 = vadd.f32 %v931_v45, %v603_v54 }
 0x2b0   : > { %v608_v58 = vsel %vm607_vm2, %v931_v45, %v604_v56 }
 0x2b1   : > { %v613_v60 = vsel %vm610_vm3, %v612_v57, %v608_v58 }
 0x2b2   : > { %v643_v61 = vmul.f32 %v613_v60, %v531_v59 }
 0x2b4   : > { %853 = vmatmul.msk.f32.vlgmr.msrb.gmra.mxu1 %vm340_vm1, %v643_v61 }
 0x321   : > { %v670_v62 = vpop.f32.mrf.mxu0 }
 0x322   : > { %v742_v1 = vsel %vm253_vm0, %v670_v62, 0.0 }
 0x327   : > { %v716_v63 = vpop.f32.mrf.mxu2 }
 0x328   : > { %v745_v5 = vsel %vm253_vm0, %v716_v63, 0.0 }
 0x32f   : > { %v739_v3 = vpop.f32.mrf.mxu3 }
 0x330   : > { %v747_v8 = vsel %vm253_vm0, %v739_v3, 0.0 }
 0x331   : > { %v693_v0 = vpop.f32.mrf.mxu1 }
 0x332   : > { %v743_v2 = vsel %vm253_vm0, %v693_v0, 0.0 }
 0x333   : > { %v744_v4 = vadd.f32 %v743_v2, %v742_v1 }
 0x335   : > { %v746_v6 = vadd.f32 %v745_v5, %v744_v4 }
 0x337   : > { %v748_v9 = vadd.f32 %v747_v8, %v746_v6 }
 0x339   : > { %v753_v10 = vadd.f32 %v915_v7, %v748_v9 }
 0x33b   : > { %754 = vst.msk [vmem:[%s215_s22] sm:$0xff] %vm253_vm0, %v753_v10 }
 0x33c   : > { %959 = shalt.err (!%p956_p3)
}
 0x33d   : > { %860 = dma.vmem_to_hbm [thread:$0]  (%p1066_p5), %s769_s26, 128, %s771_s30, %s756_s6  }
 0x33e PF: > { %p866_p4 = scmp.ge.s32.totalorder %s994_s21, 2  ;;  %s782_s12 = sand.u32 1, %s982_s18  }
 0x33f   : > { %s783_s15 = scalar_lea.sflag [#allocation3], %s782_s12 }
 0x340   : > { %p863_p7 = pnand %p866_p4, %p1070_p6 }
 0x342   : > { %p864_p8 = pneg %p863_p7 }
 0x344   : > { %977 = dma.done.wait (%p864_p8), %s783_s15, 128  }
 0x345   : > { %979 = vsyncadd (%p864_p8), %s783_s15, 4294967168  ;;  %p15_p9 = scmp.ge.s32.totalorder %s1053_s24, 4   ;;  %s1239_s18 = smov %s986_s19 }
 0x346   : > { %s1240_s19 = smov %s990_s20  ;;  %s1241_s20 = smov %s1064_s27 }
 0x347   : > { %s1242_s21 = smov %s1053_s24  ;;  %17 = sbr.rel (!%p15_p9) target bundleno = 3 (0x3), region = 75 }
 0x34c   :  { %789 = vsyncpa [#allocation3], 1 }
 0x34d   :  { %791 = vsyncpa [#allocation3 + $0x1], 1 }

</bundles_post_ra>
